<compile_context>
chip_gen: v6e
topology: v6e:2x2x1
jax: 0.10.0
libtpu: 0.0.40
codegen_flags: <defaults>
</compile_context>

<pallas_src>
import functools

import jax
import jax.numpy as jnp
from jax.experimental import pallas as pl
from jax.experimental.pallas import tpu as pltpu


LN2 = float(jnp.log(2.0))


def _sn_energy_kernel(x_ref, w1_ref, b1_ref, w2_ref, b2_ref, out_ref, acc_ref,
                      *, n_atoms):
    """Grid = (B, num_atom_tiles). One step = one atom tile of one graph.

    x_ref  : (TN, H)  node-feature tile (batch dim squeezed), bf16 (or f32)
    w1_ref : (H, H)   first linear weight, same dtype as x
    b1_ref : (1, H)   first linear bias, f32
    w2_ref : (1, H)   second linear weight (output dim 1, lane-major), f32
    b2_ref : (1, 1)   second linear bias, f32, in SMEM
    out_ref: (1, 1)   per-graph energy (written once, at the last atom tile)
    acc_ref: (1, H)   f32 lane-dense accumulator: sum over atoms of h
    """
    k = pl.program_id(1)

    @pl.when(k == 0)
    def _():
        acc_ref[...] = jnp.zeros_like(acc_ref)

    # Linear 1 as a single dense 2-D MXU matmul (bf16 in, f32 accumulate).
    h = jnp.dot(x_ref[...], w1_ref[...], preferred_element_type=jnp.float32)
    h = h + b1_ref[...]                                  # (1, H) broadcast

    # SchNet shifted softplus: log(0.5*exp(h) + 0.5) = softplus(h) - log(2)
    h = jax.nn.softplus(h) - LN2

    # Lane-dense accumulation; w2 / b2 are constant over atoms, so they are
    # folded in only at the final step:  <sum_n h_n, w2> + N*b2.
    acc_ref[...] += jnp.sum(h, axis=0, keepdims=True)    # (1, H)

    @pl.when(k == pl.num_programs(1) - 1)
    def _():
        e = jnp.sum(acc_ref[...] * w2_ref[...], axis=-1, keepdims=True)  # (1, 1)
        out_ref[...] = (e + n_atoms * b2_ref[0, 0]).astype(out_ref.dtype)


def _pick_atom_tile(n_atoms, max_tile=512):
    """Largest multiple of 8 that divides n_atoms, capped at max_tile.

    max_tile=512 keeps the double-buffered bf16 x tile tiny relative to even
    the v7x 64 MiB VMEM (2 * 512 * H * 2 B per graph) while amortizing the
    ~0.35 us per-grid-step overhead.
    """
    assert n_atoms % 8 == 0, "atom count must be a multiple of 8"
    tile = min(max_tile, n_atoms)
    tile -= tile % 8
    while n_atoms % tile != 0:
        tile -= 8
    return tile


def sn_energy_pallas(x, w1, b1, w2, b2, *, atom_tile=None):
    """Compute graph energies with a Pallas TPU kernel. x: (B, N, H) -> (B, 1)."""
    B, N, H = x.shape
    if atom_tile is None:
        atom_tile = _pick_atom_tile(N)
    assert N % atom_tile == 0, "atom count must be divisible by the atom tile"
    grid = (B, N // atom_tile)

    out3 = pl.pallas_call(
        functools.partial(_sn_energy_kernel, n_atoms=N),
        out_shape=jax.ShapeDtypeStruct((B, 1, 1), jnp.float32),
        grid_spec=pltpu.PrefetchScalarGridSpec(
            num_scalar_prefetch=0,
            grid=grid,
            in_specs=[
                pl.BlockSpec((None, atom_tile, H), lambda b, k: (b, k, 0)),  # x tile
                pl.BlockSpec((H, H), lambda b, k: (0, 0)),                   # W1
                pl.BlockSpec((1, H), lambda b, k: (0, 0)),                   # b1
                pl.BlockSpec((1, H), lambda b, k: (0, 0)),                   # w2
                pl.BlockSpec(memory_space=pltpu.MemorySpace.SMEM),           # b2
            ],
            out_specs=pl.BlockSpec((None, 1, 1), lambda b, k: (b, 0, 0)),
            scratch_shapes=[pltpu.VMEM((1, H), jnp.float32)],
        ),
        compiler_params=pltpu.CompilerParams(
            # batch axis parallel (2nd TensorCore on v7x), atom axis is the
            # sequential reduction over the resident accumulator.
            dimension_semantics=("parallel", "arbitrary"),
        ),
    )(x, w1, b1, w2, b2)
    return out3.reshape(B, 1)


def make_synthetic_model(params):
    """The `model` wrapped by SN: callable returning a dict with an 'energy' key."""

    def model(data):
        energy = sn_energy_pallas(
            data["x"], params["w1"], params["b1"], params["w2"], params["b2"]
        )
        return {"energy": energy}

    return model


class SN:
    """JAX analogue of the PyTorch SN wrapper: forward(data) = model(data)['energy']."""

    def __init__(self, model):
        self.model = model

    def __call__(self, data):
        return self.model(data)["energy"]


def _reference_energy(x, w1, b1, w2, b2):
    """Plain-JAX reference for correctness checking (f32 math)."""
    xf = x.astype(jnp.float32)
    w1f = w1.astype(jnp.float32)
    h = jnp.einsum("bnh,hd->bnd", xf, w1f,
                   precision=jax.lax.Precision.HIGHEST) + b1
    h = jax.nn.softplus(h) - LN2
    e_atom = jnp.sum(h * w2, axis=-1) + b2[0, 0]
    return jnp.sum(e_atom, axis=-1, keepdims=True)


if __name__ == "__main__":
    B, N, H = 2, 64, 128  # batch graphs, atoms per graph, hidden features

    key = jax.random.PRNGKey(0)
    kx, kw1, kb1, kw2, kb2 = jax.random.split(key, 5)

    # bf16 activations + first-layer weight (MXU fast path, half HBM traffic);
    # biases and the output head stay f32.
    x = jax.random.normal(kx, (B, N, H), dtype=jnp.float32).astype(jnp.bfloat16)
    params = {
        "w1": (jax.random.normal(kw1, (H, H), dtype=jnp.float32)
               * (1.0 / jnp.sqrt(H))).astype(jnp.bfloat16),
        "b1": jax.random.normal(kb1, (1, H), dtype=jnp.float32) * 0.1,
        "w2": jax.random.normal(kw2, (1, H), dtype=jnp.float32) * (1.0 / jnp.sqrt(H)),
        "b2": jax.random.normal(kb2, (1, 1), dtype=jnp.float32) * 0.1,
    }

    sn = SN(make_synthetic_model(params))

    data = {"x": x}
    energy = jax.block_until_ready(sn(data))          # (B, 1)

    ref = _reference_energy(x, **params)
    assert energy.shape == (B, 1)
    assert jnp.allclose(energy, ref, rtol=1e-3, atol=1e-3), (energy, ref)

    print("KERNEL_OK")
</pallas_src>

<mosaic_0001>
module attributes {stable_mosaic.version = 11 : i64} {
  func.func @_sn_energy_kernel(%arg0: i32, %arg1: i32, %arg2: memref<1x64x128xbf16, #tpu.memory_space<vmem>>, %arg3: memref<128x128xbf16, #tpu.memory_space<vmem>>, %arg4: memref<1x128xf32, #tpu.memory_space<vmem>>, %arg5: memref<1x128xf32, #tpu.memory_space<vmem>>, %arg6: memref<1x1xf32, #tpu.memory_space<smem>>, %arg7: memref<1x1x1xf32, #tpu.memory_space<vmem>>, %arg8: memref<1x128xf32, #tpu.memory_space<vmem>>) attributes {dimension_semantics = [#tpu.dimension_semantics<parallel>, #tpu.dimension_semantics<arbitrary>], iteration_bounds = array<i64: 2, 1>, scalar_prefetch = 0 : i64, scratch_operands = 1 : i64, tpu.core_type = #tpu.core_type<tc>, window_params = [{transform_indices = @transform_0, window_bounds = array<i64: 1, 64, 128>}, {pipeline_mode = #tpu.pipeline_mode<synchronous>, transform_indices = @transform_1, window_bounds = array<i64: 128, 128>}, {pipeline_mode = #tpu.pipeline_mode<synchronous>, transform_indices = @transform_2, window_bounds = array<i64: 1, 128>}, {pipeline_mode = #tpu.pipeline_mode<synchronous>, transform_indices = @transform_3, window_bounds = array<i64: 1, 128>}, {transform_indices = @transform_4, window_bounds = array<i64: 1, 1>}, {transform_indices = @transform_5, window_bounds = array<i64: 1, 1, 1>}]} {
    %c0_i32 = arith.constant 0 : i32
    %0 = arith.cmpi eq, %arg1, %c0_i32 : i32
    %1 = arith.extui %0 : i1 to i32
    %c0_i32_0 = arith.constant 0 : i32
    %2 = arith.cmpi ne, %1, %c0_i32_0 : i32
    scf.if %2 {
      %cst_17 = arith.constant 0.000000e+00 : f32
      %34 = vector.broadcast %cst_17 : f32 to vector<1x128xf32>
      %c0_18 = arith.constant 0 : index
      %c0_19 = arith.constant 0 : index
      %35 = vector.load %arg8[%c0_18, %c0_19] : memref<1x128xf32, #tpu.memory_space<vmem>>, vector<1x128xf32>
      tpu.vector_store %arg8[%c0_18, %c0_19], %34 {strides = array<i32>} : memref<1x128xf32, #tpu.memory_space<vmem>>, vector<1x128xf32>,
    } else {
    }
    %c0 = arith.constant 0 : index
    %c0_1 = arith.constant 0 : index
    %c0_2 = arith.constant 0 : index
    %3 = vector.load %arg2[%c0, %c0_1, %c0_2] : memref<1x64x128xbf16, #tpu.memory_space<vmem>>, vector<1x64x128xbf16>
    %4 = vector.shape_cast %3 : vector<1x64x128xbf16> to vector<64x128xbf16>
    %c0_3 = arith.constant 0 : index
    %c0_4 = arith.constant 0 : index
    %5 = vector.load %arg3[%c0_3, %c0_4] : memref<128x128xbf16, #tpu.memory_space<vmem>>, vector<128x128xbf16>
    %cst = arith.constant dense<0.000000e+00> : vector<64x128xf32>
    %6 = tpu.matmul %4, %5, %cst {dimension_numbers = #tpu.dot_dimension_numbers<[1], [0], [0], [1], [0, 0, 1, 1], [], []>} : vector<64x128xbf16>, vector<128x128xbf16>, vector<64x128xf32> -> vector<64x128xf32>
    %c0_5 = arith.constant 0 : index
    %c0_6 = arith.constant 0 : index
    %7 = vector.load %arg4[%c0_5, %c0_6] : memref<1x128xf32, #tpu.memory_space<vmem>>, vector<1x128xf32>
    %8 = vector.broadcast %7 : vector<1x128xf32> to vector<64x128xf32>
    %9 = arith.addf %6, %8 : vector<64x128xf32>
    %cst_7 = arith.constant 0.000000e+00 : f32
    %10 = vector.broadcast %cst_7 : f32 to vector<64x128xf32>
    %11 = arith.maximumf %9, %10 : vector<64x128xf32>
    %12 = vector.broadcast %cst_7 : f32 to vector<64x128xf32>
    %13 = arith.subf %9, %12 : vector<64x128xf32>
    %14 = arith.cmpf one, %13, %13 : vector<64x128xf32>
    %15 = vector.broadcast %cst_7 : f32 to vector<64x128xf32>
    %16 = arith.addf %9, %15 : vector<64x128xf32>
    %17 = math.absf %13 : vector<64x128xf32>
    %cst_8 = arith.constant 0.000000e+00 : f32
    %18 = vector.broadcast %cst_8 : f32 to vector<64x128xf32>
    %19 = arith.subf %18, %17 : vector<64x128xf32>
    %20 = math.exp %19 : vector<64x128xf32>
    %21 = math.log1p %20 : vector<64x128xf32>
    %22 = arith.addf %11, %21 : vector<64x128xf32>
    %23 = arith.select %14, %16, %22 : vector<64x128xi1>, vector<64x128xf32>
    %cst_9 = arith.constant 0.693147182 : f32
    %24 = vector.broadcast %cst_9 : f32 to vector<64x128xf32>
    %25 = arith.subf %23, %24 : vector<64x128xf32>
    %c0_10 = arith.constant 0 : index
    %c0_11 = arith.constant 0 : index
    %26 = vector.load %arg8[%c0_10, %c0_11] : memref<1x128xf32, #tpu.memory_space<vmem>>, vector<1x128xf32>
    %cst_12 = arith.constant dense<0.000000e+00> : vector<128xf32>
    %27 = vector.multi_reduction <add>, %25, %cst_12 [0] : vector<64x128xf32> to vector<128xf32>
    %28 = vector.shape_cast %27 : vector<128xf32> to vector<1x128xf32>
    %29 = arith.addf %26, %28 : vector<1x128xf32>
    %c0_13 = arith.constant 0 : index
    %c0_14 = arith.constant 0 : index
    %30 = vector.load %arg8[%c0_13, %c0_14] : memref<1x128xf32, #tpu.memory_space<vmem>>, vector<1x128xf32>
    tpu.vector_store %arg8[%c0_13, %c0_14], %29 {strides = array<i32>} : memref<1x128xf32, #tpu.memory_space<vmem>>, vector<1x128xf32>,
    %c0_i32_15 = arith.constant 0 : i32
    %31 = arith.cmpi eq, %arg1, %c0_i32_15 : i32
    %32 = arith.extui %31 : i1 to i32
    %c0_i32_16 = arith.constant 0 : i32
    %33 = arith.cmpi ne, %32, %c0_i32_16 : i32
    scf.if %33 {
      %c0_17 = arith.constant 0 : index
      %c0_18 = arith.constant 0 : index
      %34 = vector.load %arg8[%c0_17, %c0_18] : memref<1x128xf32, #tpu.memory_space<vmem>>, vector<1x128xf32>
      %c0_19 = arith.constant 0 : index
      %c0_20 = arith.constant 0 : index
      %35 = vector.load %arg5[%c0_19, %c0_20] : memref<1x128xf32, #tpu.memory_space<vmem>>, vector<1x128xf32>
      %36 = arith.mulf %34, %35 : vector<1x128xf32>
      %cst_21 = arith.constant dense<0.000000e+00> : vector<1xf32>
      %37 = vector.multi_reduction <add>, %36, %cst_21 [1] : vector<1x128xf32> to vector<1xf32>
      %38 = vector.shape_cast %37 : vector<1xf32> to vector<1x1xf32>
      %c0_22 = arith.constant 0 : index
      %c0_23 = arith.constant 0 : index
      %39 = memref.load %arg6[%c0_22, %c0_23] : memref<1x1xf32, #tpu.memory_space<smem>>
      %cst_24 = arith.constant 6.400000e+01 : f32
      %40 = arith.mulf %cst_24, %39 : f32
      %41 = vector.broadcast %40 : f32 to vector<1x1xf32>
      %42 = arith.addf %38, %41 : vector<1x1xf32>
      %c0_25 = arith.constant 0 : index
      %c0_26 = arith.constant 0 : index
      %c0_27 = arith.constant 0 : index
      %43 = vector.load %arg7[%c0_25, %c0_26, %c0_27] : memref<1x1x1xf32, #tpu.memory_space<vmem>>, vector<1x1x1xf32>
      %44 = vector.shape_cast %43 : vector<1x1x1xf32> to vector<1x1xf32>
      %45 = vector.shape_cast %42 : vector<1x1xf32> to vector<1x1x1xf32>
      tpu.vector_store %arg7[%c0_25, %c0_26, %c0_27], %45 {strides = array<i32>} : memref<1x1x1xf32, #tpu.memory_space<vmem>>, vector<1x1x1xf32>,
    } else {
    }
    return
  }
  func.func @transform_0(%arg0: i32, %arg1: i32) -> (i32, i32, i32) {
    %c0_i32 = arith.constant 0 : i32
    %c0_i32_0 = arith.constant 0 : i32
    return %arg0, %arg1, %c0_i32 : i32, i32, i32
  }
  func.func @transform_1(%arg0: i32, %arg1: i32) -> (i32, i32) {
    %c0_i32 = arith.constant 0 : i32
    %c0_i32_0 = arith.constant 0 : i32
    %c0_i32_1 = arith.constant 0 : i32
    return %c0_i32, %c0_i32_0 : i32, i32
  }
  func.func @transform_2(%arg0: i32, %arg1: i32) -> (i32, i32) {
    %c0_i32 = arith.constant 0 : i32
    %c0_i32_0 = arith.constant 0 : i32
    %c0_i32_1 = arith.constant 0 : i32
    return %c0_i32, %c0_i32_0 : i32, i32
  }
  func.func @transform_3(%arg0: i32, %arg1: i32) -> (i32, i32) {
    %c0_i32 = arith.constant 0 : i32
    %c0_i32_0 = arith.constant 0 : i32
    %c0_i32_1 = arith.constant 0 : i32
    return %c0_i32, %c0_i32_0 : i32, i32
  }
  func.func @transform_4(%arg0: i32, %arg1: i32) -> (i32, i32) {
    %c0_i32 = arith.constant 0 : i32
    %c0_i32_0 = arith.constant 0 : i32
    %c0_i32_1 = arith.constant 0 : i32
    return %c0_i32, %c0_i32_0 : i32, i32
  }
  func.func @transform_5(%arg0: i32, %arg1: i32) -> (i32, i32, i32) {
    %c0_i32 = arith.constant 0 : i32
    %c0_i32_0 = arith.constant 0 : i32
    %c0_i32_1 = arith.constant 0 : i32
    return %arg0, %c0_i32, %c0_i32_0 : i32, i32, i32
  }
}

</mosaic_0001>

<bundles_post_ra>
// kernel: tpu_custom_call.1
= control target key start
LH: loop header
LB: loop body
LE: loop exit
PB: predicated region body
PF: predicated region fallthrough
CT: control target
= control target key end

     0   :  { %s1335_s0 = inlined_call_operand.hbm [shape: bf16[2,64,128], index: 0, kind: input, shape index: {}]   ;;  %s1336_s1 = inlined_call_operand.hbm [shape: bf16[128,128], index: 1, kind: input, shape index: {}]   ;;  %s1337_s2 = inlined_call_operand.vmem [shape: f32[1,128], index: 2, kind: input, shape index: {}]   ;;  %s1338_s3 = inlined_call_operand.vmem [shape: f32[1,128], index: 3, kind: input, shape index: {}]   ;;  %s1339_s4 = inlined_call_operand.<no memory space> [shape: f32[1,1], index: 4, kind: input, shape index: {}]   ;;  %s1340_s5 = inlined_call_operand.vmem [shape: f32[2,1,1], index: 5, kind: output, shape index: {}]  }
   0x1   :  { %10 = sst [smem:[#allocation3]] %s1339_s4 }
   0x2   :  { %11 = vsyncpa [#allocation5], 0 }
   0x3   :  { %13 = vsyncpa [#allocation5 + $0x1], 0 }
   0x4   :  { %14 = vsyncpa [#allocation7], 0  ;;  %s1060_s20 = smov 0   ;;  %s1062_s21 = smov 0  }
   0x5   :  { %s1064_s22 = smov 0   ;;  %s1066_s23 = smov 0  }
   0x6   :  { %s1068_s24 = smov 0   ;;  %s1070_s25 = smov 0  }
   0x7 LB: > { %s712_s4 = sadd.s32 4294967295, %s1020_s25   ;;  %p54_p0 = scmp.ne.s32.totalorder %s1004_s21, %s1000_s20  ;;  %s1020_s25 = sphi %s1070_s25, %s20_s25   ;;  %s1016_s24 = sphi %s1068_s24, %s1360_s24   ;;  %s1012_s23 = sphi %s1066_s23, %s1359_s23   ;;  %s1008_s22 = sphi %s1064_s22, %s1358_s22   ;;  %s1004_s21 = sphi %s1062_s21, %s1357_s21   ;;  %s1000_s20 = sphi %s1060_s20, %s1356_s20  }
   0x8   : > { %p1090_p1 = scmp.eq.s32.totalorder %s712_s4, 0  ;;  %p714_p2 = scmp.ge.s32.totalorder %s1020_s25, 1 }
   0x9   : > { %p175_p3 = scmp.lt.s32.totalorder %s1020_s25, 3  ;;  %s1022_s29 = smov [#allocation6]  }
   0xa   : > { %p1098_p4 = por %p1090_p1, %p54_p0  ;;  %s187_s30 = sshll.u32 %s1022_s29, 4  ;;  %s188_s30 = int_to_ptr.vmem [resolvable:$true] %s187_s30 }
   0xb   : > { %p1102_p5 = pnand %p714_p2, %p175_p3  ;;  %s32_s7 = sadd.s32 1, %s1016_s24 }
   0xc   : > { %s923_s8 = scalar_lea.vmem %s188_s30, 1024  ;;  %p931_p12 = scmp.lt.s32.totalorder %s188_s30, %s188_s30 }
   0xd   : > { %p805_p6 = pneg %p1102_p5  ;;  %p924_p9 = scmp.ne.s32.totalorder %s188_s30, %s923_s8 }
   0xe   : > { %p932_p13 = scmp.lt.s32.totalorder %s923_s8, %s923_s8 }
   0xf   : > { %p1110_p7 = pnand %p805_p6, %p1090_p1 }
  0x10   : > { %p933_p0 = por %p932_p13, %p931_p12 }
  0x11   : > { %p914_p8 = pneg %p1110_p7 }
  0x13   : > { %p926_p10 = pnand %p924_p9, %p914_p8 }
  0x15   : > { %p927_p11 = pneg %p926_p10 }
  0x17   : > { %p934_p2 = pnand %p933_p0, %p927_p11 }
  0x19   : > { %937 = shalt.err (!%p934_p2)
}
  0x1a   : > { %s1023_s9 = smov 64   ;;  %s1024_s10 = smov 4  }
  0x1b   : > { %808 = dma.hbm_to_vmem [thread:$0]  (!%p1110_p7), %s1336_s1, 1024, %s188_s30, [#allocation7], %s1023_s9, %s1023_s9, %s1024_s10  }
  0x1c   : > { %p34_p3 = scmp.ge.s32.totalorder %s32_s7, 2  ;;  %s41_s13 = sadd.s32 1, %s1008_s22 }
  0x1d   : > { %p48_p6 = scmp.ne.s32.totalorder %s1008_s22, %s1004_s21  ;;  %p49_p8 = scmp.eq.s32.totalorder %s1020_s25, 0 }
  0x1e   : > { %s1362_s7 = smov (%p34_p3, %s32_s7), 0  ;;  %p814_p10 = scmp.lt.s32.totalorder %s1020_s25, 2 }
  0x1f   : > { %p50_p9 = por %p49_p8, %p48_p6  ;;  %s36_s14 = ssub.s32 %s1016_s24, %s1362_s7 }
  0x20   : > { %s210_s15 = sand.u32 1, %s1008_s22   ;;  %p39_p11 = scmp.eq.s32.totalorder %s36_s14, 0 }
  0x21   : > { %s717_s16 = sshll.u32 %s210_s15, 5  ;;  %s746_s17 = sshll.u32 %s1016_s24, 9 }
  0x22   : > { %s1137_s18 = scalar_select %p39_p11, %s1008_s22, %s41_s13  }
  0x23   : > { %s222_s4 = scalar_lea.hbm %s1335_s0, %s746_s17  ;;  %s214_s29 = scalar_lea.vmem [#allocation4], %s717_s16 }
  0x24   : > { %s223_s30 = sshll.u32 %s214_s29, 4  ;;  %p1142_p7 = pnand %p814_p10, %p50_p9  ;;  %s224_s30 = int_to_ptr.vmem [resolvable:$true] %s223_s30 }
  0x25   : > { %s211_s8 = scalar_lea.sflag [#allocation5], %s210_s15  ;;  %s951_s11 = scalar_lea.vmem %s224_s30, 512 }
  0x26   : > { %p940_p12 = pneg %p1142_p7  ;;  %p952_p13 = scmp.ne.s32.totalorder %s224_s30, %s951_s11 }
  0x27   : > { %s1025_s12 = smov [#allocation4]  }
  0x28   : > { %p954_p0 = pnand %p952_p13, %p940_p12  ;;  %s956_s13 = sshll.u32 %s1025_s12, 4  ;;  %s957_s13 = int_to_ptr.vmem [resolvable:$false] %s956_s13 }
  0x29   : > { %s958_s14 = scalar_lea.vmem %s957_s13, 1024  ;;  %p959_p3 = scmp.lt.s32.totalorder %s224_s30, %s957_s13 }
  0x2a   : > { %p955_p2 = pneg %p954_p0  ;;  %p960_p6 = scmp.lt.s32.totalorder %s958_s14, %s951_s11 }
  0x2c   : > { %p961_p8 = por %p960_p6, %p959_p3 }
  0x2e   : > { %p962_p9 = pnand %p961_p8, %p955_p2 }
  0x30   : > { %965 = shalt.err (!%p962_p9)
}
  0x31   : > { %812 = dma.hbm_to_vmem [thread:$0]  (!%p1142_p7), %s222_s4, 512, %s224_s30, %s211_s8, %s1023_s9, %s1023_s9, %s1024_s10  }
  0x32   : > { %235 = sbr.rel (%p1102_p5) target bundleno = 518 (0x206), region = 40  ;;  %s237_s15 = sand.u32 (!%p1102_p5), 1, %s1004_s21  }
  0x33   : > { %s721_s16 = sshll.u32 (!%p1102_p5), %s237_s15, 5  ;;  %s238_s17 = scalar_lea.sflag (!%p1102_p5), [#allocation5], %s237_s15 }
  0x34   : > { %s1156_s19 = scalar_lea.vmem (!%p1102_p5), [#allocation4], %s721_s16 }
  0x37   : > { %991 = dma.done.wait (%p1098_p4), %s238_s17, 512  }
  0x38   : > { %993 = vsyncadd (%p1098_p4), %s238_s17, 4294966784 }
  0x39   : > { %995 = dma.done.wait (%p1090_p1), [#allocation7], 1024  }
  0x3a   : > { %997 = vsyncadd (%p1090_p1), [#allocation7], 4294966272  ;;  %v868_v0 = vld [vmem:[#allocation6 + $0x38] sm:$0xff]   ;;  %v869_v1 = vld [vmem:[#allocation6 + $0x30] sm:$0xff]   ;;  %v1026_v12 = vmov 0.0   ;;  %s626_s10 = sld [smem:[#allocation3]] }
  0x3b   : > { %759 = vmatprep.subr.bf16.mxu0 %v868_v0  ;;  %783 = vmatprep.subr.bf16.mxu1 %v868_v0  ;;  %v870_v2 = vld [vmem:[#allocation6 + $0x28] sm:$0xff]   ;;  %v871_v3 = vld [vmem:[#allocation6 + $0x20] sm:$0xff]   ;;  %v877_v5 = vld [vmem:[%s1156_s19 + $0x10] sm:$0xff]   ;;  %279 = vst [vmem:[#allocation2] sm:$0x1] %v1026_v12  ;;  %p271_p1 = scmp.lt.s32.totalorder %s1012_s23, 1 }
  0x3c   : > { %760 = vmatpush3.bf16.msra.mxu0 %v868_v0  ;;  %791 = vmatpush3.bf16.msra.mxu1 %v868_v0  ;;  %v876_v4 = vld [vmem:[%s1156_s19] sm:$0xff]   ;;  %v872_v6 = vld [vmem:[#allocation6 + $0x18] sm:$0xff]   ;;  %v873_v7 = vld [vmem:[#allocation6 + $0x10] sm:$0xff]  }
  0x3d   : > { %761 = vmatprep.subr.bf16.mxu0 %v869_v1  ;;  %784 = vmatprep.subr.bf16.mxu1 %v869_v1  ;;  %v874_v8 = vld [vmem:[#allocation6 + $0x8] sm:$0xff]   ;;  %v875_v9 = vld [vmem:[#allocation6] sm:$0xff]   ;;  %v879_v11 = vld [vmem:[%s1156_s19 + $0x18] sm:$0xff]   ;;  %s1364_s23 = smov (!%p271_p1, %s1012_s23), 1 }
  0x3e   : > { %775 = vmatprep.mubr.bf16.mxu0 %v876_v4  ;;  %779 = vmatprep.mubr.bf16.mxu1 %v877_v5  ;;  %v878_v10 = vld [vmem:[%s1156_s19 + $0x8] sm:$0xff]   ;;  %v723_v13 = vld [vmem:[%s1337_s2] ss:$0 sm:$0xff]  ;;  %s273_s30 = scalar_lea.vmem %s1340_s5, %s1364_s23 }
  0x40   : > { %762 = vmatpush3.bf16.msra.mxu0 %v869_v1  ;;  %792 = vmatpush3.bf16.msra.mxu1 %v869_v1  ;;  %s627_s20 = smul.f32 64.0, %s626_s10 }
  0x41   : > { %763 = vmatprep.subr.bf16.mxu0 %v870_v2  ;;  %785 = vmatprep.subr.bf16.mxu1 %v870_v2 }
  0x44   : > { %764 = vmatpush3.bf16.msra.mxu0 %v870_v2  ;;  %793 = vmatpush3.bf16.msra.mxu1 %v870_v2 }
  0x45   : > { %765 = vmatprep.subr.bf16.mxu0 %v871_v3  ;;  %786 = vmatprep.subr.bf16.mxu1 %v871_v3 }
  0x48   : > { %766 = vmatpush3.bf16.msra.mxu0 %v871_v3  ;;  %794 = vmatpush3.bf16.msra.mxu1 %v871_v3 }
  0x49   : > { %767 = vmatprep.subr.bf16.mxu0 %v872_v6  ;;  %787 = vmatprep.subr.bf16.mxu1 %v872_v6 }
  0x4c   : > { %768 = vmatpush3.bf16.msra.mxu0 %v872_v6  ;;  %795 = vmatpush3.bf16.msra.mxu1 %v872_v6 }
  0x4d   : > { %769 = vmatprep.subr.bf16.mxu0 %v873_v7  ;;  %788 = vmatprep.subr.bf16.mxu1 %v873_v7 }
  0x50   : > { %770 = vmatpush3.bf16.msra.mxu0 %v873_v7  ;;  %796 = vmatpush3.bf16.msra.mxu1 %v873_v7 }
  0x51   : > { %771 = vmatprep.subr.bf16.mxu0 %v874_v8  ;;  %789 = vmatprep.subr.bf16.mxu1 %v874_v8 }
  0x54   : > { %772 = vmatpush3.bf16.msra.mxu0 %v874_v8  ;;  %797 = vmatpush3.bf16.msra.mxu1 %v874_v8 }
  0x55   : > { %773 = vmatprep.subr.bf16.mxu0 %v875_v9  ;;  %790 = vmatprep.subr.bf16.mxu1 %v875_v9 }
  0x58   : > { %774 = vmatpush3.bf16.msra.mxu0 %v875_v9  ;;  %798 = vmatpush3.bf16.msra.mxu1 %v875_v9 }
  0x5b   : > { %776 = vmatmul.mubr.bf16.vlgmr.msra.gmra.mxu0 %v878_v10  ;;  %780 = vmatmul.mubr.bf16.vlgmr.msra.gmra.mxu1 %v879_v11 }
 0x11b   : > { %v777_v14 = vpop.f32.mrf.mxu0  ;;  %v781_v15 = vpop.f32.mrf.mxu1 }
 0x11c   : > { %v1173_v16 = vadd.f32 %v777_v14, %v723_v13  ;;  %v1175_v17 = vadd.f32 %v781_v15, %v723_v13 }
 0x11d   : > { %v417_v18 = vpop.f32.mrf.mxu0  ;;  %v433_v19 = vpop.f32.mrf.mxu1 }
 0x11e   : > { %v474_v20 = vand.u32 2147483647, %v1173_v16  ;;  %v478_v21 = vand.u32 2147483647, %v1175_v17  ;;  %v1179_v22 = vadd.f32 %v723_v13, %v417_v18  ;;  %v1181_v23 = vadd.f32 %v723_v13, %v433_v19 }
 0x11f   : > { %v778_v24 = vpop.f32.mrf.mxu0  ;;  %v782_v25 = vpop.f32.mrf.mxu1  ;;  %v450_v10 = vmax.f32 %v1173_v16, 0.0  ;;  %vm458_vm3 = vcmp.ne.f32.partialorder %v1173_v16, %v1173_v16  ;;  %vm462_vm14 = vcmp.ne.f32.partialorder %v1175_v17, %v1175_v17 }
 0x120   : > { %v482_v26 = vsub.f32 0.0, %v474_v20  ;;  %v1183_v27 = vadd.f32 %v778_v24, %v723_v13  ;;  %v486_v28 = vsub.f32 0.0, %v478_v21  ;;  %v472_v29 = vand.u32 2147483647, %v1179_v22 }
 0x121   : > { %v1186_v30 = vadd.f32 %v782_v25, %v723_v13  ;;  %v476_v32 = vand.u32 2147483647, %v1181_v23  ;;  %v420_v34 = vpop.f32.mrf.mxu0  ;;  %v436_v35 = vpop.f32.mrf.mxu1  ;;  %v448_v11 = vmax.f32 %v1179_v22, 0.0  ;;  %v452_v18 = vmax.f32 %v1181_v23, 0.0 }
 0x122   : > { %v492_v31 = vmul.f32 1.442695, %v482_v26  ;;  %v480_v33 = vsub.f32 0.0, %v472_v29  ;;  %v475_v37 = vand.u32 2147483647, %v1183_v27  ;;  %v1191_v43 = vadd.f32 %v723_v13, %v420_v34 }
 0x123   : > { %v484_v36 = vsub.f32 0.0, %v476_v32  ;;  %v500_v38 = vmul.f32 1.442695, %v486_v28  ;;  %v479_v40 = vand.u32 2147483647, %v1186_v30  ;;  %v1193_v44 = vadd.f32 %v723_v13, %v436_v35 }
 0x124   : > { %880 = vpow2.f32 %v492_v31  ;;  %v488_v39 = vmul.f32 1.442695, %v480_v33  ;;  %v483_v42 = vsub.f32 0.0, %v475_v37  ;;  %v473_v48 = vand.u32 2147483647, %v1191_v43 }
 0x125   : > { %v496_v41 = vmul.f32 1.442695, %v484_v36  ;;  %v487_v45 = vsub.f32 0.0, %v479_v40  ;;  %v477_v49 = vand.u32 2147483647, %v1193_v44  ;;  %v451_v20 = vmax.f32 %v1183_v27, 0.0 }
 0x126   : > { %882 = vpow2.f32 %v488_v39  ;;  %v494_v46 = vmul.f32 1.442695, %v483_v42  ;;  %v481_v50 = vsub.f32 0.0, %v473_v48  ;;  %vm456_vm1 = vcmp.ne.f32.partialorder %v1179_v22, %v1179_v22 }
 0x127   : > { %884 = vpow2.f32 %v496_v41  ;;  %v502_v47 = vmul.f32 1.442695, %v487_v45  ;;  %v485_v51 = vsub.f32 0.0, %v477_v49  ;;  %v449_v41 = vmax.f32 %v1191_v43, 0.0 }
 0x128   : > { %886 = vpow2.f32 %v500_v38  ;;  %v490_v52 = vmul.f32 1.442695, %v481_v50  ;;  %vm457_vm4 = vcmp.ne.f32.partialorder %v1191_v43, %v1191_v43  ;;  %vm459_vm6 = vcmp.ne.f32.partialorder %v1183_v27, %v1183_v27 }
 0x129   : > { %888 = vpow2.f32 %v494_v46  ;;  %v498_v53 = vmul.f32 1.442695, %v485_v51  ;;  %vm460_vm12 = vcmp.ne.f32.partialorder %v1181_v23, %v1181_v23  ;;  %vm461_vm13 = vcmp.ne.f32.partialorder %v1193_v44, %v1193_v44 }
 0x12a   : > { %890 = vpow2.f32 %v502_v47  ;;  %vm463_vm15 = vcmp.ne.f32.partialorder %v1186_v30, %v1186_v30 }
 0x12b   : > { %892 = vpow2.f32 %v490_v52 }
 0x12c   : > { %894 = vpow2.f32 %v498_v53 }
 0x131   : > { %v881_v54 = vpop.eup %880 }
 0x132   : > { %v522_v55 = vadd.f32 1.0, %v881_v54  ;;  %v525_v7 = vmul.f32 -0.5, %v881_v54  ;;  %v528_v8 = vand.u32 2147483647, %v881_v54 }
 0x133   : > { %v883_v56 = vpop.eup %882 }
 0x134   : > { %v1197_v57 = vpop.eup %884  ;;  %v504_v58 = vadd.f32 1.0, %v883_v56  ;;  %896 = vlog2.f32 %v522_v55  ;;  %v507_v6 = vmul.f32 -0.5, %v883_v56  ;;  %v510_v15 = vand.u32 2147483647, %v883_v56 }
 0x135   : > { %v1199_v59 = vpop.eup %886  ;;  %v540_v61 = vadd.f32 1.0, %v1197_v57  ;;  %v543_v19 = vmul.f32 -0.5, %v1197_v57  ;;  %v526_v21 = vadd.f32 1.0, %v525_v7  ;;  %vm1223_vm0 = vcmp.lt.f32.partialorder %v528_v8, 0.0004427343 }
 0x136   : > { %v1201_v60 = vpop.eup %888  ;;  %898 = vlog2.f32 %v504_v58  ;;  %v558_v0 = vadd.f32 1.0, %v1199_v59  ;;  %v508_v12 = vadd.f32 1.0, %v507_v6  ;;  %v561_v24 = vmul.f32 -0.5, %v1199_v59 }
 0x137   : > { %v531_v62 = vadd.f32 1.0, %v1201_v60  ;;  %v1205_v63 = vpop.eup %890  ;;  %v534_v13 = vmul.f32 -0.5, %v1201_v60  ;;  %v564_v29 = vand.u32 2147483647, %v1199_v59  ;;  %v546_v31 = vand.u32 2147483647, %v1197_v57 }
 0x138   : > { %v1208_v1 = vpop.eup %892  ;;  %v567_v3 = vadd.f32 1.0, %v1205_v63  ;;  %v509_v34 = vmul.f32 %v883_v56, %v508_v12  ;;  %vm1232_vm2 = vcmp.lt.f32.partialorder %v510_v15, 0.0004427343  ;;  %v544_v39 = vadd.f32 1.0, %v543_v19 }
 0x139   : > { %900 = vlog2.f32 %v531_v62  ;;  %v1210_v2 = vpop.eup %894  ;;  %v513_v4 = vadd.f32 1.0, %v1208_v1  ;;  %v516_v26 = vmul.f32 -0.5, %v1208_v1  ;;  %v535_v35 = vadd.f32 1.0, %v534_v13 }
 0x13a   : > { %902 = vlog2.f32 %v540_v61  ;;  %v549_v5 = vadd.f32 1.0, %v1210_v2  ;;  %v552_v36 = vmul.f32 -0.5, %v1210_v2  ;;  %v537_v40 = vand.u32 2147483647, %v1201_v60 }
 0x13b   : > { %904 = vlog2.f32 %v558_v0  ;;  %v527_v42 = vmul.f32 %v881_v54, %v526_v21  ;;  %v517_v47 = vadd.f32 1.0, %v516_v26  ;;  %v562_v48 = vadd.f32 1.0, %v561_v24 }
 0x13c   : > { %906 = vlog2.f32 %v513_v4  ;;  %vm1244_vm5 = vcmp.lt.f32.partialorder %v546_v31, 0.0004427343  ;;  %v570_v50 = vmul.f32 -0.5, %v1205_v63  ;;  %v519_v51 = vand.u32 2147483647, %v1208_v1 }
 0x13d   : > { %908 = vlog2.f32 %v549_v5  ;;  %v536_v55 = vmul.f32 %v1201_v60, %v535_v35  ;;  %v553_v56 = vadd.f32 1.0, %v552_v36  ;;  %v545_v62 = vmul.f32 %v1197_v57, %v544_v39 }
 0x13e   : > { %910 = vlog2.f32 %v567_v3  ;;  %vm1256_vm7 = vcmp.lt.f32.partialorder %v537_v40, 0.0004427343  ;;  %v555_v3 = vand.u32 2147483647, %v1210_v2  ;;  %v573_v6 = vand.u32 2147483647, %v1205_v63 }
 0x13f   : > { %v518_v60 = vmul.f32 %v1208_v1, %v517_v47  ;;  %vm520_vm8 = vcmp.lt.f32.partialorder %v519_v51, 0.0004427343  ;;  %v554_v15 = vmul.f32 %v1210_v2, %v553_v56  ;;  %v453_v26 = vmax.f32 %v1193_v44, 0.0 }
 0x140   : > { %vm1272_vm9 = vcmp.lt.f32.partialorder %v555_v3, 0.0004427343  ;;  %vm565_vm10 = vcmp.lt.f32.partialorder %v564_v29, 0.0004427343  ;;  %vm574_vm11 = vcmp.lt.f32.partialorder %v573_v6, 0.0004427343 }
 0x141   : > { %v897_v9 = vpop.eup %896 }
 0x142   : > { %v524_v33 = vmul.f32 0.6931472, %v897_v9 }
 0x143   : > { %v899_v14 = vpop.eup %898 }
 0x144   : > { %v506_v25 = vmul.f32 0.6931472, %v899_v14  ;;  %v530_v53 = vsel %vm1223_vm0, %v527_v42, %v524_v33  ;;  %vm622_vm0 = vcmask 1040384  }
 0x145   : > { %v578_v9 = vadd.f32 %v530_v53, %v450_v10  ;;  %v563_v10 = vmul.f32 %v1199_v59, %v562_v48 }
 0x146   : > { %v901_v32 = vpop.eup %900  ;;  %v512_v45 = vsel %vm1232_vm2, %v509_v34, %v506_v25  ;;  %v454_v34 = vmax.f32 %v1175_v17, 0.0 }
 0x147   : > { %v903_v37 = vpop.eup %902  ;;  %v533_v46 = vmul.f32 0.6931472, %v901_v32  ;;  %v576_v61 = vadd.f32 %v512_v45, %v448_v11  ;;  %v571_v11 = vadd.f32 1.0, %v570_v50  ;;  %v586_v2 = vsel %vm458_vm3, %v1173_v16, %v578_v9 }
 0x148   : > { %v905_v52 = vpop.eup %904  ;;  %v542_v54 = vmul.f32 0.6931472, %v903_v37 }
 0x149   : > { %v907_v58 = vpop.eup %906  ;;  %v539_v5 = vsel %vm1256_vm7, %v536_v55, %v533_v46  ;;  %v560_v12 = vmul.f32 0.6931472, %v905_v52  ;;  %v584_v19 = vsel %vm456_vm1, %v1179_v22, %v576_v61  ;;  %v572_v32 = vmul.f32 %v1205_v63, %v571_v11 }
 0x14a   : > { %v909_v4 = vpop.eup %908  ;;  %v515_v7 = vmul.f32 0.6931472, %v907_v58  ;;  %v548_v13 = vsel %vm1244_vm5, %v545_v62, %v542_v54  ;;  %v579_v21 = vadd.f32 %v539_v5, %v451_v20  ;;  %v736_v31 = vadd.f32 -0.6931472, %v584_v19 }
 0x14b   : > { %v911_v8 = vpop.eup %910  ;;  %v551_v57 = vmul.f32 0.6931472, %v909_v4  ;;  %v580_v22 = vadd.f32 %v548_v13, %v452_v18  ;;  %v566_v20 = vsel %vm565_vm10, %v563_v10, %v560_v12  ;;  %v738_v18 = vadd.f32 -0.6931472, %v586_v2 }
 0x14c   : > { %v521_v14 = vsel %vm520_vm8, %v518_v60, %v515_v7  ;;  %v569_v25 = vmul.f32 0.6931472, %v911_v8  ;;  %v587_v16 = vsel %vm459_vm6, %v1183_v27, %v579_v21  ;;  %v582_v36 = vadd.f32 %v566_v20, %v454_v34 }
 0x14d   : > { %v577_v24 = vadd.f32 %v521_v14, %v449_v41  ;;  %v557_v28 = vsel %vm1272_vm9, %v554_v15, %v551_v57  ;;  %v588_v37 = vsel %vm460_vm12, %v1181_v23, %v580_v22  ;;  %v455_v63 = vmax.f32 %v1186_v30, 0.0 }
 0x14e   : > { %v581_v29 = vadd.f32 %v557_v28, %v453_v26  ;;  %v575_v35 = vsel %vm574_vm11, %v572_v32, %v569_v25  ;;  %v739_v38 = vadd.f32 -0.6931472, %v587_v16  ;;  %v740_v41 = vadd.f32 -0.6931472, %v588_v37 }
 0x14f   : > { %v585_v59 = vsel %vm457_vm4, %v1191_v43, %v577_v24  ;;  %v583_v40 = vadd.f32 %v575_v35, %v455_v63  ;;  %v590_v45 = vsel %vm462_vm14, %v1175_v17, %v582_v36  ;;  %v600_v17 = vld [vmem:[#allocation2] sm:$0x1]  ;;  %v628_v4 = vstv %s627_s20 }
 0x150   : > { %v737_v33 = vadd.f32 -0.6931472, %v585_v59  ;;  %v589_v27 = vsel %vm461_vm13, %v1193_v44, %v581_v29  ;;  %v742_v48 = vadd.f32 -0.6931472, %v590_v45  ;;  %vm630_vm1 = vcmask 0  }
 0x151   : > { %v741_v23 = vadd.f32 -0.6931472, %v589_v27  ;;  %v591_v47 = vsel %vm463_vm15, %v1186_v30, %v583_v40  ;;  %v620_v30 = vld [vmem:[%s1338_s3] sm:$0x1] }
 0x152   : > { %v601_v43 = vadd.f32 %v737_v33, %v736_v31  ;;  %v743_v50 = vadd.f32 -0.6931472, %v591_v47 }
 0x154   : > { %v602_v39 = vadd.f32 %v738_v18, %v601_v43 }
 0x156   : > { %v603_v42 = vadd.f32 %v739_v38, %v602_v39 }
 0x158   : > { %v604_v46 = vadd.f32 %v740_v41, %v603_v42 }
 0x15a   : > { %v605_v49 = vadd.f32 %v741_v23, %v604_v46 }
 0x15c   : > { %v606_v51 = vadd.f32 %v742_v48, %v605_v49 }
 0x15e   : > { %v607_v52 = vadd.f32 %v743_v50, %v606_v51 }
 0x160   : > { %v608_v44 = vrot.slane %v607_v52, 4 }
 0x162   : > { %v609_v53 = vadd.f32 %v608_v44, %v607_v52 }
 0x164   : > { %v610_v54 = vrot.slane %v609_v53, 2 }
 0x166   : > { %v611_v55 = vadd.f32 %v610_v54, %v609_v53 }
 0x168   : > { %v612_v56 = vrot.slane %v611_v55, 1 }
 0x16a   : > { %v613_v58 = vadd.f32 %v612_v56, %v611_v55 }
 0x16c   : > { %v614_v61 = vadd.f32 %v613_v58, %v600_v17 }
 0x16e   : > { %615 = vst [vmem:[#allocation2] sm:$0x1] %v614_v61 }
 0x175   : > { %v619_v62 = vld [vmem:[#allocation2] sm:$0x1] }
 0x176   : > { %v621_v0 = vmul.f32 %v620_v30, %v619_v62 }
 0x178   : > { %v623_v3 = vsel %vm622_vm0, %v621_v0, 0.0 }
 0x179   : > { %624 = vadd.xlane.f32.xlu0 %v623_v3 }
 0x202   : > { %v625_v5 = vpop.xlane.xlu0 %624 }
 0x203   : > { %v629_v6 = vadd.f32 %v628_v4, %v625_v5 }
 0x205   : > { %631 = vst.msk [vmem:[%s273_s30] sm:$0x1] %vm630_vm1, %v629_v6 }
 0x206 PF: > { %s20_s25 = sadd.s32 1, %s1020_s25   ;;  %s1356_s20 = smov %s1004_s21 }
 0x207   : > { %p17_p4 = scmp.ge.s32.totalorder %s20_s25, 4   ;;  %s1357_s21 = smov %s1008_s22 }
 0x208   : > { %s1358_s22 = smov %s1137_s18  ;;  %s1359_s23 = smov %s1016_s24 }
 0x209   : > { %s1360_s24 = smov %s1362_s7  ;;  %19 = sbr.rel (!%p17_p4) target bundleno = 7 (0x7), region = 92 }
 0x20e   :  { %649 = vsyncpa [#allocation5], 1 }
 0x20f   :  { %651 = vsyncpa [#allocation5 + $0x1], 1 }
 0x210   :  { %652 = vsyncpa [#allocation7], 1 }

</bundles_post_ra>
